<compile_context>
chip_gen: v6e
topology: v6e:2x2x1
jax: 0.10.0
libtpu: 0.0.40
codegen_flags: <defaults>
</compile_context>

<pallas_src>
import jax
import jax.numpy as jnp
from jax.experimental import pallas as pl
from jax.experimental.pallas import tpu as pltpu  # noqa: F401  (TPU backend assumed)

N_PAD = 128  # lane-dense output width (one vreg); columns >= 2 are zero padding


def _classifier_kernel(tok_ref, emb_ref, w_ref, o_ref):
    # tok_ref: (B*S, 1) int32, batch-major: row b*S + s holds tokens[s, b]
    # emb_ref: (V, E)   float32 embedding table (resident in VMEM)
    # w_ref:   (E, 128) float32 linear weight, transposed and zero-padded on lanes
    # o_ref:   (S, 128) float32 logits tile (cols >= 2 zero; bias added by caller)
    BS = tok_ref.shape[0]
    V, E = emb_ref.shape
    S = o_ref.shape[0]
    B = BS // S

    # --- fused embedding gather: one-hot(tokens) @ emb on the MXU ---------------
    # TODO(synk): for large vocab, replace the one-hot MXU gather with scalar-prefetch
    # token ids (SMEM) + per-row async-copy gather from an HBM-resident table.
    tok = tok_ref[...]                                              # (B*S, 1)
    iota = jax.lax.broadcasted_iota(jnp.int32, (BS, V), 1)          # (B*S, V)
    onehot = (tok == iota).astype(jnp.float32)                      # (B*S, V)
    e_all = jnp.dot(onehot, emb_ref[...],
                    preferred_element_type=jnp.float32)             # (B*S, E)

    # --- masked softmax over the batch axis, then mean over batch ---------------
    # Batch lives on the leading slab axis: rows [b*S, (b+1)*S) are batch b, so all
    # batch reductions are elementwise VPU ops on B (S, E) slabs.
    slabs = [e_all[b * S:(b + 1) * S, :] for b in range(B)]         # B x (S, E)

    m = slabs[0]
    for bb in range(1, B):
        m = jnp.maximum(m, slabs[bb])                               # max over batch

    ps = [jnp.exp(sl - m) * (sl != 0.0).astype(jnp.float32) for sl in slabs]

    denom = ps[0]
    for bb in range(1, B):
        denom = denom + ps[bb]                                      # sum over batch

    # mean_b( p_b / denom ) == (sum_b p_b) * (1/denom) * (1/B); NaN preserved if denom==0.
    inv_denom = pl.reciprocal(denom, approx=False)                  # exact 1/x
    y = denom * inv_denom * (1.0 / B)                               # (S, E)

    # --- linear layer on a lane-dense (S, 128) tile (unmasked stores) -----------
    o_ref[...] = jnp.dot(y, w_ref[...], preferred_element_type=jnp.float32)


@jax.jit
def text_classifier_forward(tokens, emb, w, b):
    """tokens: (S, B) int; emb: (V, E); w: (2, E); b: (2,)  ->  (S, 2) logits."""
    S, B = tokens.shape
    V, E = emb.shape

    # Index/layout glue only (tiny): batch-major flat token ids (B*S, 1).
    tok2d = tokens.T.reshape(B * S, 1).astype(jnp.int32)

    # Zero-pad W^T to a lane-dense (E, 128) tile; bias is added after the kernel.
    w_pad = jnp.zeros((E, N_PAD), jnp.float32).at[:, :2].set(w.astype(jnp.float32).T)

    out_pad = pl.pallas_call(
        _classifier_kernel,
        out_shape=jax.ShapeDtypeStruct((S, N_PAD), jnp.float32),
        in_specs=[
            pl.BlockSpec((B * S, 1), lambda: (0, 0)),
            pl.BlockSpec((V, E), lambda: (0, 0)),
            pl.BlockSpec((E, N_PAD), lambda: (0, 0)),
        ],
        out_specs=pl.BlockSpec((S, N_PAD), lambda: (0, 0)),
    )(tok2d, emb.astype(jnp.float32), w_pad)

    return out_pad[:, :2] + b.astype(jnp.float32)[None, :]


def _reference_forward(tokens, emb, w, b):
    """Pure-JAX reference mirroring the PyTorch module, for a self-check."""
    e = jnp.take(emb.astype(jnp.float32), tokens, axis=0)           # (S, B, E)
    mask = (e != 0).astype(jnp.float32)
    m = jnp.max(e, axis=1, keepdims=True)
    p = jnp.exp(e - m) * mask
    p = p / jnp.sum(p, axis=1, keepdims=True)
    y = jnp.mean(p, axis=1)
    return y @ w.T.astype(jnp.float32) + b.astype(jnp.float32)


if __name__ == "__main__":
    SEQ_LEN, BATCH, EMB_DIM, VOCAB = 8, 2, 32, 16

    key = jax.random.PRNGKey(0)
    k_emb, k_w, k_b, k_tok = jax.random.split(key, 4)

    # deterministic "pretrained" embedding table; row 0 is the padding row (all zeros)
    emb = jax.random.normal(k_emb, (VOCAB, EMB_DIM), dtype=jnp.float32)
    emb = emb.at[0].set(0.0)

    # deterministic linear layer (emb_dim -> 2)
    w = jax.random.normal(k_w, (2, EMB_DIM), dtype=jnp.float32) * 0.1
    b = jax.random.normal(k_b, (2,), dtype=jnp.float32) * 0.1

    # tokens (seq_len, batch); keep batch column 0 nonzero so no row is fully padded
    tokens = jax.random.randint(k_tok, (SEQ_LEN, BATCH), 0, VOCAB, dtype=jnp.int32)
    tokens = tokens.at[:, 0].set(jnp.maximum(tokens[:, 0], 1))

    out = jax.block_until_ready(text_classifier_forward(tokens, emb, w, b))
    ref = _reference_forward(tokens, emb, w, b)

    assert out.shape == (SEQ_LEN, 2)
    assert jnp.allclose(out, ref, atol=1e-5, rtol=1e-5), (out, ref)

    print("KERNEL_OK")
</pallas_src>

<mosaic_0001>
module attributes {stable_mosaic.version = 11 : i64} {
  func.func @_classifier_kernel(%arg0: memref<16x1xi32, #tpu.memory_space<vmem>>, %arg1: memref<16x32xf32, #tpu.memory_space<vmem>>, %arg2: memref<32x128xf32, #tpu.memory_space<vmem>>, %arg3: memref<8x128xf32, #tpu.memory_space<vmem>>) attributes {dimension_semantics = [], scalar_prefetch = 0 : i64, scratch_operands = 0 : i64, tpu.core_type = #tpu.core_type<tc>} {
    %c0 = arith.constant 0 : index
    %c0_0 = arith.constant 0 : index
    %0 = vector.load %arg0[%c0, %c0_0] : memref<16x1xi32, #tpu.memory_space<vmem>>, vector<16x1xi32>
    %1 = tpu.iota {dimensions = array<i32: 1>} : vector<16x16xi32>
    %2 = vector.broadcast %0 : vector<16x1xi32> to vector<16x16xi32>
    %3 = arith.cmpi eq, %2, %1 : vector<16x16xi32>
    %4 = arith.extui %3 : vector<16x16xi1> to vector<16x16xi32>
    %5 = arith.sitofp %4 : vector<16x16xi32> to vector<16x16xf32>
    %c0_1 = arith.constant 0 : index
    %c0_2 = arith.constant 0 : index
    %6 = vector.load %arg1[%c0_1, %c0_2] : memref<16x32xf32, #tpu.memory_space<vmem>>, vector<16x32xf32>
    %cst = arith.constant dense<0.000000e+00> : vector<16x32xf32>
    %7 = tpu.matmul %5, %6, %cst {dimension_numbers = #tpu.dot_dimension_numbers<[1], [0], [0], [1], [0, 0, 1, 1], [], []>} : vector<16x16xf32>, vector<16x32xf32>, vector<16x32xf32> -> vector<16x32xf32>
    %8 = vector.extract_strided_slice %7 {offsets = [0, 0], sizes = [8, 32], strides = [1, 1]} : vector<16x32xf32> to vector<8x32xf32>
    %9 = vector.extract_strided_slice %7 {offsets = [8, 0], sizes = [8, 32], strides = [1, 1]} : vector<16x32xf32> to vector<8x32xf32>
    %10 = arith.maximumf %8, %9 : vector<8x32xf32>
    %11 = arith.subf %8, %10 : vector<8x32xf32>
    %12 = math.exp %11 : vector<8x32xf32>
    %cst_3 = arith.constant 0.000000e+00 : f32
    %13 = vector.broadcast %cst_3 : f32 to vector<8x32xf32>
    %14 = arith.cmpf one, %8, %13 : vector<8x32xf32>
    %15 = arith.extui %14 : vector<8x32xi1> to vector<8x32xi32>
    %16 = arith.sitofp %15 : vector<8x32xi32> to vector<8x32xf32>
    %17 = arith.mulf %12, %16 : vector<8x32xf32>
    %18 = arith.subf %9, %10 : vector<8x32xf32>
    %19 = math.exp %18 : vector<8x32xf32>
    %cst_4 = arith.constant 0.000000e+00 : f32
    %20 = vector.broadcast %cst_4 : f32 to vector<8x32xf32>
    %21 = arith.cmpf one, %9, %20 : vector<8x32xf32>
    %22 = arith.extui %21 : vector<8x32xi1> to vector<8x32xi32>
    %23 = arith.sitofp %22 : vector<8x32xi32> to vector<8x32xf32>
    %24 = arith.mulf %19, %23 : vector<8x32xf32>
    %25 = arith.addf %17, %24 : vector<8x32xf32>
    %26 = tpu.reciprocal %25 : vector<8x32xf32> -> vector<8x32xf32>
    %27 = arith.mulf %25, %26 : vector<8x32xf32>
    %cst_5 = arith.constant 5.000000e-01 : f32
    %28 = vector.broadcast %cst_5 : f32 to vector<8x32xf32>
    %29 = arith.mulf %27, %28 : vector<8x32xf32>
    %c0_6 = arith.constant 0 : index
    %c0_7 = arith.constant 0 : index
    %30 = vector.load %arg2[%c0_6, %c0_7] : memref<32x128xf32, #tpu.memory_space<vmem>>, vector<32x128xf32>
    %cst_8 = arith.constant dense<0.000000e+00> : vector<8x128xf32>
    %31 = tpu.matmul %29, %30, %cst_8 {dimension_numbers = #tpu.dot_dimension_numbers<[1], [0], [0], [1], [0, 0, 1, 1], [], []>} : vector<8x32xf32>, vector<32x128xf32>, vector<8x128xf32> -> vector<8x128xf32>
    %c0_9 = arith.constant 0 : index
    %c0_10 = arith.constant 0 : index
    %32 = vector.load %arg3[%c0_9, %c0_10] : memref<8x128xf32, #tpu.memory_space<vmem>>, vector<8x128xf32>
    tpu.vector_store %arg3[%c0_9, %c0_10], %31 {strides = array<i32>} : memref<8x128xf32, #tpu.memory_space<vmem>>, vector<8x128xf32>,
    return
  }
}

</mosaic_0001>

<bundles_post_ra>
// kernel: text_classifier_forward.1
= control target key start
LH: loop header
LB: loop body
LE: loop exit
PB: predicated region body
PF: predicated region fallthrough
CT: control target
= control target key end

     0   :  { %v260_v0 = vmov 0   ;;  %v261_v3 = vmov 0.0   ;;  %v16_v6 = vlaneseq  ;;  %vm32_vm0 = vcmask 130048   ;;  %s310_s0 = inlined_call_operand.vmem [shape: s32[16,1], index: 0, kind: input, shape index: {}]   ;;  %s311_s1 = inlined_call_operand.vmem [shape: f32[16,32], index: 1, kind: input, shape index: {}]   ;;  %s312_s2 = inlined_call_operand.vmem [shape: f32[32,128], index: 2, kind: input, shape index: {}]   ;;  %s313_s3 = inlined_call_operand.vmem [shape: f32[8,128], index: 3, kind: output, shape index: {}]  }
   0x1   :  { %253 = vset.pattern.permute.xlu0 %v260_v0  ;;  %v14_v1 = vld [vmem:[%s310_s0] sm:$0xff]  ;;  %v31_v2 = vld [vmem:[%s311_s1 + $0x8] sm:$0xff]  ;;  %239 = vmatprep.subr.mxu1 %v261_v3  ;;  %v136_v12 = vld [vmem:[%s312_s2 + $0x18] sm:$0xff]  ;;  %vm262_vm3 = vmmov 0   ;;  %vm137_vm6 = vcmask 261120  }
   0x2   :  { %19 = vperm.xlu0 %253, %v14_v1   ;;  %232 = vmatprep.subr.mxu0 %v31_v2  ;;  %v30_v4 = vld [vmem:[%s311_s1] sm:$0xff]  ;;  %v15_v5 = vld [vmem:[%s310_s0 + $0x8] sm:$0xff]  ;;  %v17_v7 = vand.u32 127, %v16_v6  ;;  %v135_v13 = vld [vmem:[%s312_s2 + $0x10] sm:$0xff] }
   0x3   :  { %233 = vmatpush3.msra.mxu0 %v31_v2  ;;  %240 = vmatpush3.msra.mxu1 %v136_v12  ;;  %v134_v14 = vld [vmem:[%s312_s2 + $0x8] sm:$0xff]  ;;  %v133_v15 = vld [vmem:[%s312_s2] sm:$0xff] }
   0x4   :  { %234 = vmatprep.subr.mxu0 %v30_v4  ;;  %241 = vmatprep.subr.mxu1 %v261_v3 }
   0x5   :  { %235 = vmatpush3.msra.mxu0 %v30_v4  ;;  %242 = vmatpush3.msra.mxu1 %v135_v13 }
   0x6   :  { %22 = vperm.xlu0 %253, %v15_v5   ;;  %243 = vmatprep.subr.mxu1 %v261_v3 }
   0x7   :  { %244 = vmatpush3.msra.mxu1 %v134_v14  ;;  %247 = vmatprep.mubr.msk.f32.mxu1 %vm262_vm3, %v261_v3 }
   0x8   :  { %245 = vmatprep.subr.mxu1 %v261_v3 }
   0x9   :  { %246 = vmatpush3.msra.mxu1 %v133_v15 }
  0x7d   :  { %v20_v8 = vpop.permute.xlu0 %19 }
  0x7e   :  { %vm24_vm1 = vcmp.eq.s32.totalorder %v20_v8, %v17_v7 }
  0x7f   :  { %v216_v9 = vsel %vm24_vm1, 1.0, %v261_v3 }
  0x80   :  { %236 = vmatprep.mubr.msk.f32.mxu0 %vm32_vm0, %v216_v9 }
  0x81   :  { %v23_v10 = vpop.permute.xlu0 %22 }
  0x82   :  { %vm25_vm2 = vcmp.eq.s32.totalorder %v23_v10, %v17_v7 }
  0x83   :  { %v217_v11 = vsel %vm25_vm2, 1.0, %v261_v3 }
  0x84   :  { %237 = vmatmul.mubr.msk.f32.vlgmr.msra.gmra.mxu0 %vm32_vm0, %v217_v11 }
 0x144   :  { %v238_v16 = vpop.f32.mrf.mxu0 }
 0x145   :  { %vm125_vm5 = vcmp.ne.f32.partialorder %v238_v16, 0.0 }
 0x146   :  { %v105_v17 = vpop.f32.mrf.mxu0  ;;  %v221_v26 = vsel %vm125_vm5, 1.0, %v261_v3 }
 0x147   :  { %v114_v18 = vmax.f32 %v105_v17, %v238_v16  ;;  %vm118_vm4 = vcmp.ne.f32.partialorder %v105_v17, 0.0 }
 0x148   :  { %v220_v24 = vsel %vm118_vm4, 1.0, %v261_v3 }
 0x149   :  { %v115_v19 = vsub.f32 %v105_v17, %v114_v18  ;;  %v122_v20 = vsub.f32 %v238_v16, %v114_v18 }
 0x14b   :  { %v116_v21 = vmul.f32 1.442695, %v115_v19  ;;  %v123_v22 = vmul.f32 1.442695, %v122_v20 }
 0x14d   :  { %254 = vpow2.f32 %v116_v21 }
 0x14e   :  { %256 = vpow2.f32 %v123_v22 }
 0x15a   :  { %v255_v23 = vpop.eup %254 }
 0x15b   :  { %v257_v25 = vpop.eup %256  ;;  %v121_v27 = vmul.f32 %v255_v23, %v220_v24 }
 0x15c   :  { %v128_v28 = vmul.f32 %v257_v25, %v221_v26 }
 0x15e   :  { %v129_v29 = vadd.f32 %v128_v28, %v121_v27 }
 0x160   :  { %258 = vrcp.f32 %v129_v29 }
 0x16d   :  { %v259_v30 = vpop.eup %258 }
 0x16e   :  { %v131_v31 = vmul.f32 %v259_v30, %v129_v29 }
 0x170   :  { %v132_v32 = vmul.f32 0.5, %v131_v31 }
 0x172   :  { %248 = vmatmul.mubr.msk.f32.vlgmr.msra.gmra.mxu1 %vm137_vm6, %v132_v32 }
 0x232   :  { %v207_v33 = vpop.f32.mrf.mxu1 }
 0x233   :  { %211 = vst [vmem:[%s313_s3] sm:$0xff] %v207_v33 }
 0x234   :  { %v249_v34 = vpop.f32.mrf.mxu1 }

</bundles_post_ra>
